<compile_context>
chip_gen: v7x
topology: tpu7x:2x2x1
jax: 0.10.0
libtpu: 0.0.40
codegen_flags: <defaults>
</compile_context>

<pallas_src>
import functools

import jax
import jax.numpy as jnp
from jax.experimental import pallas as pl
from jax.experimental.pallas import tpu as pltpu


def _fgnet_kernel(x_ref, w1_ref, b1_ref, w2_ref, b2_ref, o_ref):
    # x_ref : (Cin, T)     one image's pixel tile, channels on sublanes, pixels on lanes
    # w1_ref: (Cmid, Cin)  conv1 weight with BN scale folded in
    # b1_ref: (Cmid, 1)    conv1 bias with BN shift folded in
    # w2_ref: (Cmid, Cout) conv2 weight (transposed)
    # b2_ref: (Cout, 1)    conv2 bias
    # o_ref : (Cout, T)    lane-dense output tile
    x = x_ref[...]

    # conv1 (1x1) + folded BN: (Cmid, Cin) @ (Cin, T) on the MXU, f32 accumulate.
    h = jnp.dot(w1_ref[...], x, preferred_element_type=jnp.float32)
    h = jnp.maximum(h + b1_ref[...], 0.0)            # bias + ReLU (VPU)

    # conv2 (1x1, Cmid -> Cout).
    w2 = w2_ref[...]
    if w2.shape[1] == 1:
        # Cout == 1: keep it off the MXU — broadcast-mul + cross-sublane reduce.
        y = jnp.sum(h * w2, axis=0, keepdims=True)                      # (1, T)
    else:
        y = jax.lax.dot_general(w2, h, (((0,), (0,)), ((), ())),
                                preferred_element_type=jnp.float32)     # (Cout, T)

    y = y + b2_ref[...]
    o_ref[...] = jax.nn.sigmoid(y).astype(o_ref.dtype)


def _round_up(x, m):
    return ((x + m - 1) // m) * m


@functools.partial(jax.jit, static_argnames=("t_hw",))
def foreground_predict_net(x_nchw, params, t_hw=2048):
    """x_nchw: (N, Cin, H, W) float32 -> (N, Cout, H, W) float32.

    NCHW is consumed natively (only free reshapes in the wrapper); the spatial
    dim H*W is tiled with up to `t_hw` pixels per grid step (must be a multiple
    of 128) and padded with cdiv when ragged.
    """
    w1f, b1f, w2t, b2 = params
    N, Cin, H, W = x_nchw.shape
    Cmid, Cout = w2t.shape
    HW = H * W

    assert t_hw % 128 == 0, "spatial tile must be a multiple of the 128-lane width"
    tile = min(t_hw, _round_up(HW, 128))   # biggest lane-dense tile that fits the image
    HW_pad = _round_up(HW, tile)

    x3 = x_nchw.reshape(N, Cin, HW)        # free reshape, no data movement
    if HW_pad != HW:
        x3 = jnp.pad(x3, ((0, 0), (0, 0), (0, HW_pad - HW)))

    grid = (N, HW_pad // tile)

    out = pl.pallas_call(
        _fgnet_kernel,
        out_shape=jax.ShapeDtypeStruct((N, Cout, HW_pad), jnp.float32),
        grid_spec=pltpu.PrefetchScalarGridSpec(
            num_scalar_prefetch=0,
            grid=grid,
            in_specs=[
                pl.BlockSpec((None, Cin, tile), lambda n, j: (n, 0, j)),   # x (batch squeezed)
                pl.BlockSpec((Cmid, Cin), lambda n, j: (0, 0)),            # w1 (BN folded)
                pl.BlockSpec((Cmid, 1), lambda n, j: (0, 0)),              # b1 (BN folded)
                pl.BlockSpec((Cmid, Cout), lambda n, j: (0, 0)),           # w2^T
                pl.BlockSpec((Cout, 1), lambda n, j: (0, 0)),              # b2
            ],
            out_specs=pl.BlockSpec((None, Cout, tile), lambda n, j: (n, 0, j)),
        ),
        compiler_params=pltpu.CompilerParams(
            dimension_semantics=("parallel", "parallel")),
    )(x3, w1f, b1f, w2t, b2)

    if HW_pad != HW:
        out = out[:, :, :HW]
    return out.reshape(N, Cout, H, W)


def init_raw_params(key, in_channels=256, mid_channels=16, out_channels=1):
    """Mirrors the PyTorch module's init_weights(): conv weights
    kaiming_normal_(mode='fan_out', relu), conv biases 0, BN gamma=1, beta=0,
    running_mean=0, running_var=1 (inference-mode BatchNorm)."""
    k1, k2 = jax.random.split(key)
    std1 = (2.0 / mid_channels) ** 0.5     # fan_out of a 1x1 conv = out_channels
    std2 = (2.0 / out_channels) ** 0.5
    w1 = jax.random.normal(k1, (mid_channels, in_channels), jnp.float32) * std1
    b1 = jnp.zeros((mid_channels,), jnp.float32)
    w2 = jax.random.normal(k2, (out_channels, mid_channels), jnp.float32) * std2
    b2 = jnp.zeros((out_channels,), jnp.float32)
    gamma = jnp.ones((mid_channels,), jnp.float32)
    beta = jnp.zeros((mid_channels,), jnp.float32)
    running_mean = jnp.zeros((mid_channels,), jnp.float32)
    running_var = jnp.ones((mid_channels,), jnp.float32)
    return (w1, b1, gamma, beta, running_mean, running_var, w2, b2)


def fold_params(raw, eps=1e-5):
    """Fold BatchNorm into conv1 and lay weights out for the kernel."""
    w1, b1, gamma, beta, mean, var, w2, b2 = raw
    scale = gamma / jnp.sqrt(var + eps)
    shift = beta - mean * scale
    w1f = w1 * scale[:, None]              # (Cmid, Cin)
    b1f = (b1 * scale + shift)[:, None]    # (Cmid, 1)
    w2t = w2.T                             # (Cmid, Cout)
    b2c = b2[:, None]                      # (Cout, 1)
    return (w1f, b1f, w2t, b2c)


def _reference(x_nchw, raw, eps=1e-5):
    """Pure-JAX reference of the un-folded forward pass (conv1 -> BN -> ReLU -> conv2 -> sigmoid)."""
    w1, b1, gamma, beta, mean, var, w2, b2 = raw
    N, Cin, H, W = x_nchw.shape
    xf = x_nchw.reshape(N, Cin, H * W)
    h = jnp.einsum('oc,ncp->nop', w1, xf) + b1[None, :, None]
    scale = gamma / jnp.sqrt(var + eps)
    shift = beta - mean * scale
    h = jnp.maximum(h * scale[None, :, None] + shift[None, :, None], 0.0)
    y = jnp.einsum('oc,ncp->nop', w2, h) + b2[None, :, None]
    y = jax.nn.sigmoid(y)
    return y.reshape(N, w2.shape[0], H, W)


if __name__ == "__main__":
    key = jax.random.PRNGKey(0)
    kx, kp = jax.random.split(key)

    # Small example consistent with the module: batch=2, in_channels=256, 16x16 spatial.
    N, Cin, H, W = 2, 256, 16, 16
    x = jax.random.normal(kx, (N, Cin, H, W), jnp.float32)

    raw = init_raw_params(kp, in_channels=Cin, mid_channels=16, out_channels=1)
    params = fold_params(raw)

    out = foreground_predict_net(x, params)
    out = jax.block_until_ready(out)

    ref = _reference(x, raw)
    assert out.shape == (N, 1, H, W)
    assert jnp.allclose(out, ref, atol=1e-5, rtol=1e-5)

    print("KERNEL_OK")
</pallas_src>

<mosaic_0001>
module attributes {stable_mosaic.version = 11 : i64} {
  func.func @_fgnet_kernel(%arg0: i32, %arg1: i32, %arg2: memref<1x256x256xf32, #tpu.memory_space<vmem>>, %arg3: memref<16x256xf32, #tpu.memory_space<vmem>>, %arg4: memref<16x1xf32, #tpu.memory_space<vmem>>, %arg5: memref<16x1xf32, #tpu.memory_space<vmem>>, %arg6: memref<1x1xf32, #tpu.memory_space<vmem>>, %arg7: memref<1x1x256xf32, #tpu.memory_space<vmem>>) attributes {dimension_semantics = [#tpu.dimension_semantics<parallel>, #tpu.dimension_semantics<parallel>], iteration_bounds = array<i64: 2, 1>, scalar_prefetch = 0 : i64, scratch_operands = 0 : i64, tpu.core_type = #tpu.core_type<tc>, window_params = [{transform_indices = @transform_0, window_bounds = array<i64: 1, 256, 256>}, {pipeline_mode = #tpu.pipeline_mode<synchronous>, transform_indices = @transform_1, window_bounds = array<i64: 16, 256>}, {pipeline_mode = #tpu.pipeline_mode<synchronous>, transform_indices = @transform_2, window_bounds = array<i64: 16, 1>}, {pipeline_mode = #tpu.pipeline_mode<synchronous>, transform_indices = @transform_3, window_bounds = array<i64: 16, 1>}, {pipeline_mode = #tpu.pipeline_mode<synchronous>, transform_indices = @transform_4, window_bounds = array<i64: 1, 1>}, {transform_indices = @transform_5, window_bounds = array<i64: 1, 1, 256>}]} {
    %c0 = arith.constant 0 : index
    %c0_0 = arith.constant 0 : index
    %c0_1 = arith.constant 0 : index
    %0 = vector.load %arg2[%c0, %c0_0, %c0_1] : memref<1x256x256xf32, #tpu.memory_space<vmem>>, vector<1x256x256xf32>
    %1 = vector.shape_cast %0 : vector<1x256x256xf32> to vector<256x256xf32>
    %c0_2 = arith.constant 0 : index
    %c0_3 = arith.constant 0 : index
    %2 = vector.load %arg3[%c0_2, %c0_3] : memref<16x256xf32, #tpu.memory_space<vmem>>, vector<16x256xf32>
    %cst = arith.constant dense<0.000000e+00> : vector<16x256xf32>
    %3 = tpu.matmul %2, %1, %cst {dimension_numbers = #tpu.dot_dimension_numbers<[1], [0], [0], [1], [0, 0, 1, 1], [], []>} : vector<16x256xf32>, vector<256x256xf32>, vector<16x256xf32> -> vector<16x256xf32>
    %c0_4 = arith.constant 0 : index
    %c0_5 = arith.constant 0 : index
    %4 = vector.load %arg4[%c0_4, %c0_5] : memref<16x1xf32, #tpu.memory_space<vmem>>, vector<16x1xf32>
    %5 = vector.broadcast %4 : vector<16x1xf32> to vector<16x256xf32>
    %6 = arith.addf %3, %5 : vector<16x256xf32>
    %cst_6 = arith.constant 0.000000e+00 : f32
    %7 = vector.broadcast %cst_6 : f32 to vector<16x256xf32>
    %8 = arith.maximumf %6, %7 : vector<16x256xf32>
    %c0_7 = arith.constant 0 : index
    %c0_8 = arith.constant 0 : index
    %9 = vector.load %arg5[%c0_7, %c0_8] : memref<16x1xf32, #tpu.memory_space<vmem>>, vector<16x1xf32>
    %10 = vector.broadcast %9 : vector<16x1xf32> to vector<16x256xf32>
    %11 = arith.mulf %8, %10 : vector<16x256xf32>
    %cst_9 = arith.constant dense<0.000000e+00> : vector<256xf32>
    %12 = vector.multi_reduction <add>, %11, %cst_9 [0] : vector<16x256xf32> to vector<256xf32>
    %13 = vector.shape_cast %12 : vector<256xf32> to vector<1x256xf32>
    %c0_10 = arith.constant 0 : index
    %c0_11 = arith.constant 0 : index
    %14 = vector.load %arg6[%c0_10, %c0_11] : memref<1x1xf32, #tpu.memory_space<vmem>>, vector<1x1xf32>
    %15 = vector.broadcast %14 : vector<1x1xf32> to vector<1x256xf32>
    %16 = arith.addf %13, %15 : vector<1x256xf32>
    %17 = arith.negf %16 : vector<1x256xf32>
    %18 = math.exp %17 : vector<1x256xf32>
    %cst_12 = arith.constant 1.000000e+00 : f32
    %19 = vector.broadcast %cst_12 : f32 to vector<1x256xf32>
    %20 = arith.addf %19, %18 : vector<1x256xf32>
    %21 = arith.divf %19, %20 : vector<1x256xf32>
    %c0_13 = arith.constant 0 : index
    %c0_14 = arith.constant 0 : index
    %c0_15 = arith.constant 0 : index
    %22 = vector.load %arg7[%c0_13, %c0_14, %c0_15] : memref<1x1x256xf32, #tpu.memory_space<vmem>>, vector<1x1x256xf32>
    %23 = vector.shape_cast %22 : vector<1x1x256xf32> to vector<1x256xf32>
    %24 = vector.shape_cast %21 : vector<1x256xf32> to vector<1x1x256xf32>
    tpu.vector_store %arg7[%c0_13, %c0_14, %c0_15], %24 {strides = array<i32>} : memref<1x1x256xf32, #tpu.memory_space<vmem>>, vector<1x1x256xf32>,
    return
  }
  func.func @transform_0(%arg0: i32, %arg1: i32) -> (i32, i32, i32) {
    %c0_i32 = arith.constant 0 : i32
    %c0_i32_0 = arith.constant 0 : i32
    return %arg0, %c0_i32, %arg1 : i32, i32, i32
  }
  func.func @transform_1(%arg0: i32, %arg1: i32) -> (i32, i32) {
    %c0_i32 = arith.constant 0 : i32
    %c0_i32_0 = arith.constant 0 : i32
    %c0_i32_1 = arith.constant 0 : i32
    return %c0_i32, %c0_i32_0 : i32, i32
  }
  func.func @transform_2(%arg0: i32, %arg1: i32) -> (i32, i32) {
    %c0_i32 = arith.constant 0 : i32
    %c0_i32_0 = arith.constant 0 : i32
    %c0_i32_1 = arith.constant 0 : i32
    return %c0_i32, %c0_i32_0 : i32, i32
  }
  func.func @transform_3(%arg0: i32, %arg1: i32) -> (i32, i32) {
    %c0_i32 = arith.constant 0 : i32
    %c0_i32_0 = arith.constant 0 : i32
    %c0_i32_1 = arith.constant 0 : i32
    return %c0_i32, %c0_i32_0 : i32, i32
  }
  func.func @transform_4(%arg0: i32, %arg1: i32) -> (i32, i32) {
    %c0_i32 = arith.constant 0 : i32
    %c0_i32_0 = arith.constant 0 : i32
    %c0_i32_1 = arith.constant 0 : i32
    return %c0_i32, %c0_i32_0 : i32, i32
  }
  func.func @transform_5(%arg0: i32, %arg1: i32) -> (i32, i32, i32) {
    %c0_i32 = arith.constant 0 : i32
    %c0_i32_0 = arith.constant 0 : i32
    return %arg0, %c0_i32, %arg1 : i32, i32, i32
  }
}

</mosaic_0001>

<bundles_post_ra>
// kernel: foreground_predict_net.1
= control target key start
LH: loop header
LB: loop body
LE: loop exit
PB: predicated region body
PF: predicated region fallthrough
CT: control target
= control target key end

     0   :  { %s787_s20 = smov 0   ;;  %s789_s21 = smov 0   ;;  %s914_s0 = inlined_call_operand.vmem [shape: f32[2,256,256], index: 0, kind: input, shape index: {}]   ;;  %s915_s1 = inlined_call_operand.vmem [shape: f32[16,256], index: 1, kind: input, shape index: {}]   ;;  %s916_s2 = inlined_call_operand.vmem [shape: f32[16,1], index: 2, kind: input, shape index: {}]   ;;  %s917_s3 = inlined_call_operand.vmem [shape: f32[16,1], index: 3, kind: input, shape index: {}]   ;;  %s918_s4 = inlined_call_operand.<no memory space> [shape: f32[1,1], index: 4, kind: input, shape index: {}]   ;;  %s919_s5 = inlined_call_operand.vmem [shape: f32[2,1,256], index: 5, kind: output, shape index: {}]  }
   0x1   :  { %v10_v0 = vstv %s918_s4  ;;  %s791_s22 = smov 0  }
   0x2   :  { %11 = vst [vmem:[#allocation2] sm:$0x1] %v10_v0 }
   0x3 LB: > { %s29_s4 = sadd.s32 1, %s746_s21  ;;  %p587_p0 = scmp.ge.s32.totalorder %s750_s22, 1  ;;  %s750_s22 = sphi %s791_s22, %s17_s22   ;;  %s746_s21 = sphi %s789_s21, %s921_s21   ;;  %s742_s20 = sphi %s787_s20, %s920_s20  }
   0x4   : > { %p31_p1 = scmp.ge.s32.totalorder %s29_s4, 2  ;;  %p210_p2 = scmp.lt.s32.totalorder %s750_s22, 3 }
   0x6   : > { %s923_s4 = smov (%p31_p1, %s29_s4), 0  ;;  %p211_p3 = pnand %p587_p0, %p210_p2 }
   0x7   : > { %p246_p4 = scmp.lt.s32.totalorder (!%p211_p3), %s742_s20, 1  ;;  %v329_v1 = vld [vmem:[%s915_s1 + $0x8] sm:$0xff] (!%p211_p3)  ;;  %v331_v2 = vld [vmem:[%s915_s1 + $0x18] sm:$0xff] (!%p211_p3)  ;;  %v332_v3 = vld [vmem:[%s916_s2] sm:$0xff] (!%p211_p3)  ;;  %v752_v4 = vmov (!%p211_p3), 0  }
   0x8   : > { %214 = sbr.rel (%p211_p3) target bundleno = 353 (0x161), region = 40  ;;  %408 = vmatprep.mubr.f32.mxu0 (!%p211_p3), %v329_v1  ;;  %414 = vmatprep.mubr.f32.mxu1 (!%p211_p3), %v331_v2  ;;  %v425_v5 = vld [vmem:[%s917_s3] sm:$0xff] (!%p211_p3)  ;;  %v333_v6 = vld [vmem:[%s916_s2 + $0x8] sm:$0xff] (!%p211_p3) }
   0x9   : > { %718 = vset.pattern.permute.xlu0 (!%p211_p3), %v752_v4  ;;  %719 = vset.pattern.permute.xlu1 (!%p211_p3), %v752_v4  ;;  %v426_v7 = vld [vmem:[%s917_s3 + $0x8] sm:$0xff] (!%p211_p3)  ;;  %v455_v21 = vld [vmem:[#allocation2] sm:$0x1] (!%p211_p3) }
   0xa   : > { %336 = vperm.xlu0 (!%p211_p3), %718, %v332_v3   ;;  %429 = vperm.xlu1 (!%p211_p3), %719, %v425_v5  }
   0xe   : > { %341 = vperm.xlu0 (!%p211_p3), %718, %v333_v6   ;;  %434 = vperm.xlu1 (!%p211_p3), %719, %v426_v7  }
   0xf   : > { %s925_s20 = smov (!%p246_p4, %s742_s20), 1 }
  0x10   : > { %s595_s6 = sshll.u32 %s925_s20, 9  ;;  %s590_s18 = sshll.u32 %s925_s20, 1 }
  0x11   : > { %s829_s13 = scalar_lea.vmem %s914_s0, %s595_s6  ;;  %s262_s24 = scalar_lea.vmem %s919_s5, %s590_s18 }
  0x12   : > { %v265_v8 = vld [vmem:[%s829_s13 + $0x8] sm:$0xff]  ;;  %v267_v9 = vld [vmem:[%s829_s13 + $0x18] sm:$0xff]  ;;  %v264_v10 = vld [vmem:[%s829_s13] sm:$0xff]  ;;  %458 = vperm.xlu0 %718, %v455_v21  }
  0x13   : > { %v596_v11 = vpack.c.bf16 %v267_v9, %v265_v8  ;;  %v266_v12 = vld [vmem:[%s829_s13 + $0x10] sm:$0xff]  ;;  %v269_v13 = vld [vmem:[%s829_s13 + $0x28] sm:$0xff]  ;;  %v271_v14 = vld [vmem:[%s829_s13 + $0x38] sm:$0xff] }
  0x14   : > { %v598_v15 = vpack.c.bf16 %v266_v12, %v264_v10  ;;  %v600_v16 = vpack.c.bf16 %v271_v14, %v269_v13  ;;  %v268_v17 = vld [vmem:[%s829_s13 + $0x20] sm:$0xff]  ;;  %v270_v18 = vld [vmem:[%s829_s13 + $0x30] sm:$0xff]  ;;  %v273_v19 = vld [vmem:[%s829_s13 + $0x48] sm:$0xff] }
  0x15   : > { %597 = vmatprep.subr.bf16.mxu0 %v596_v11  ;;  %660 = vmatprep.subr.bf16.mxu1 %v596_v11  ;;  %v275_v20 = vld [vmem:[%s829_s13 + $0x58] sm:$0xff]  ;;  %v602_v22 = vpack.c.bf16 %v270_v18, %v268_v17  ;;  %v272_v24 = vld [vmem:[%s829_s13 + $0x40] sm:$0xff]  ;;  %v274_v25 = vld [vmem:[%s829_s13 + $0x50] sm:$0xff] }
  0x16   : > { %599 = vmatpush1.bf16.msra.mxu0 %v598_v15  ;;  %676 = vmatpush1.bf16.msra.mxu1 %v598_v15  ;;  %v604_v23 = vpack.c.bf16 %v275_v20, %v273_v19  ;;  %v277_v26 = vld [vmem:[%s829_s13 + $0x68] sm:$0xff]  ;;  %v279_v27 = vld [vmem:[%s829_s13 + $0x78] sm:$0xff]  ;;  %v606_v28 = vpack.c.bf16 %v274_v25, %v272_v24  ;;  %v276_v30 = vld [vmem:[%s829_s13 + $0x60] sm:$0xff] }
  0x17   : > { %601 = vmatprep.subr.bf16.mxu0 %v600_v16  ;;  %661 = vmatprep.subr.bf16.mxu1 %v600_v16  ;;  %v608_v29 = vpack.c.bf16 %v279_v27, %v277_v26  ;;  %v278_v31 = vld [vmem:[%s829_s13 + $0x70] sm:$0xff]  ;;  %v281_v32 = vld [vmem:[%s829_s13 + $0x88] sm:$0xff]  ;;  %v283_v33 = vld [vmem:[%s829_s13 + $0x98] sm:$0xff] }
  0x18   : > { %v610_v34 = vpack.c.bf16 %v278_v31, %v276_v30  ;;  %v612_v35 = vpack.c.bf16 %v283_v33, %v281_v32  ;;  %v280_v36 = vld [vmem:[%s829_s13 + $0x80] sm:$0xff]  ;;  %v282_v37 = vld [vmem:[%s829_s13 + $0x90] sm:$0xff]  ;;  %v285_v38 = vld [vmem:[%s829_s13 + $0xa8] sm:$0xff] }
  0x19   : > { %v287_v39 = vld [vmem:[%s829_s13 + $0xb8] sm:$0xff]  ;;  %v614_v40 = vpack.c.bf16 %v282_v37, %v280_v36  ;;  %v284_v42 = vld [vmem:[%s829_s13 + $0xa0] sm:$0xff]  ;;  %v286_v43 = vld [vmem:[%s829_s13 + $0xb0] sm:$0xff] }
  0x1a   : > { %603 = vmatpush1.bf16.msra.mxu0 %v602_v22  ;;  %677 = vmatpush1.bf16.msra.mxu1 %v602_v22  ;;  %v616_v41 = vpack.c.bf16 %v287_v39, %v285_v38  ;;  %v289_v44 = vld [vmem:[%s829_s13 + $0xc8] sm:$0xff]  ;;  %v291_v45 = vld [vmem:[%s829_s13 + $0xd8] sm:$0xff]  ;;  %v618_v46 = vpack.c.bf16 %v286_v43, %v284_v42  ;;  %v288_v48 = vld [vmem:[%s829_s13 + $0xc0] sm:$0xff] }
  0x1b   : > { %605 = vmatprep.subr.bf16.mxu0 %v604_v23  ;;  %662 = vmatprep.subr.bf16.mxu1 %v604_v23  ;;  %v620_v47 = vpack.c.bf16 %v291_v45, %v289_v44  ;;  %v290_v49 = vld [vmem:[%s829_s13 + $0xd0] sm:$0xff]  ;;  %v293_v50 = vld [vmem:[%s829_s13 + $0xe8] sm:$0xff]  ;;  %v295_v51 = vld [vmem:[%s829_s13 + $0xf8] sm:$0xff] }
  0x1c   : > { %v622_v52 = vpack.c.bf16 %v290_v49, %v288_v48  ;;  %v624_v53 = vpack.c.bf16 %v295_v51, %v293_v50  ;;  %v292_v54 = vld [vmem:[%s829_s13 + $0xe0] sm:$0xff]  ;;  %v294_v55 = vld [vmem:[%s829_s13 + $0xf0] sm:$0xff]  ;;  %v297_v56 = vld [vmem:[%s829_s13 + $0x108] sm:$0xff] }
  0x1d   : > { %v299_v57 = vld [vmem:[%s829_s13 + $0x118] sm:$0xff]  ;;  %v626_v58 = vpack.c.bf16 %v294_v55, %v292_v54  ;;  %v296_v60 = vld [vmem:[%s829_s13 + $0x100] sm:$0xff]  ;;  %v298_v61 = vld [vmem:[%s829_s13 + $0x110] sm:$0xff] }
  0x1e   : > { %607 = vmatpush1.bf16.msra.mxu0 %v606_v28  ;;  %678 = vmatpush1.bf16.msra.mxu1 %v606_v28  ;;  %v628_v59 = vpack.c.bf16 %v299_v57, %v297_v56  ;;  %v301_v62 = vld [vmem:[%s829_s13 + $0x128] sm:$0xff]  ;;  %v303_v63 = vld [vmem:[%s829_s13 + $0x138] sm:$0xff]  ;;  %v630_v0 = vpack.c.bf16 %v298_v61, %v296_v60  ;;  %v300_v2 = vld [vmem:[%s829_s13 + $0x120] sm:$0xff] }
  0x1f   : > { %609 = vmatprep.subr.bf16.mxu0 %v608_v29  ;;  %663 = vmatprep.subr.bf16.mxu1 %v608_v29  ;;  %v632_v1 = vpack.c.bf16 %v303_v63, %v301_v62  ;;  %v302_v3 = vld [vmem:[%s829_s13 + $0x130] sm:$0xff]  ;;  %v305_v4 = vld [vmem:[%s829_s13 + $0x148] sm:$0xff]  ;;  %v307_v5 = vld [vmem:[%s829_s13 + $0x158] sm:$0xff]  ;;  %v461_v63 = vlaneseq }
  0x20   : > { %v634_v6 = vpack.c.bf16 %v302_v3, %v300_v2  ;;  %v636_v7 = vpack.c.bf16 %v307_v5, %v305_v4  ;;  %v304_v8 = vld [vmem:[%s829_s13 + $0x140] sm:$0xff]  ;;  %v306_v9 = vld [vmem:[%s829_s13 + $0x150] sm:$0xff]  ;;  %v309_v10 = vld [vmem:[%s829_s13 + $0x168] sm:$0xff] }
  0x21   : > { %v311_v11 = vld [vmem:[%s829_s13 + $0x178] sm:$0xff]  ;;  %v638_v12 = vpack.c.bf16 %v306_v9, %v304_v8  ;;  %v308_v14 = vld [vmem:[%s829_s13 + $0x160] sm:$0xff]  ;;  %v310_v15 = vld [vmem:[%s829_s13 + $0x170] sm:$0xff]  ;;  %v462_v4 = vshrl.u32 %v461_v63, 7  ;;  %vm499_vm0 = vcmp.lt.s32.totalorder %v461_v63, 256 }
  0x22   : > { %611 = vmatpush1.bf16.msra.mxu0 %v610_v34  ;;  %679 = vmatpush1.bf16.msra.mxu1 %v610_v34  ;;  %v640_v13 = vpack.c.bf16 %v311_v11, %v309_v10  ;;  %v313_v16 = vld [vmem:[%s829_s13 + $0x188] sm:$0xff]  ;;  %v315_v17 = vld [vmem:[%s829_s13 + $0x198] sm:$0xff]  ;;  %v642_v18 = vpack.c.bf16 %v310_v15, %v308_v14  ;;  %v312_v20 = vld [vmem:[%s829_s13 + $0x180] sm:$0xff] }
  0x23   : > { %613 = vmatprep.subr.bf16.mxu0 %v612_v35  ;;  %664 = vmatprep.subr.bf16.mxu1 %v612_v35  ;;  %v644_v19 = vpack.c.bf16 %v315_v17, %v313_v16  ;;  %v314_v21 = vld [vmem:[%s829_s13 + $0x190] sm:$0xff]  ;;  %v317_v22 = vld [vmem:[%s829_s13 + $0x1a8] sm:$0xff]  ;;  %v319_v23 = vld [vmem:[%s829_s13 + $0x1b8] sm:$0xff]  ;;  %v463_v9 = vsub.s32 0, %v462_v4 }
  0x24   : > { %v646_v24 = vpack.c.bf16 %v314_v21, %v312_v20  ;;  %v648_v25 = vpack.c.bf16 %v319_v23, %v317_v22  ;;  %v316_v26 = vld [vmem:[%s829_s13 + $0x1a0] sm:$0xff]  ;;  %v318_v27 = vld [vmem:[%s829_s13 + $0x1b0] sm:$0xff]  ;;  %v321_v28 = vld [vmem:[%s829_s13 + $0x1c8] sm:$0xff] }
  0x25   : > { %v323_v29 = vld [vmem:[%s829_s13 + $0x1d8] sm:$0xff]  ;;  %v650_v30 = vpack.c.bf16 %v318_v27, %v316_v26  ;;  %v320_v32 = vld [vmem:[%s829_s13 + $0x1c0] sm:$0xff]  ;;  %v322_v33 = vld [vmem:[%s829_s13 + $0x1d0] sm:$0xff]  ;;  %v753_v26 = vmov 1966171168  }
  0x26   : > { %615 = vmatpush1.bf16.msra.mxu0 %v614_v40  ;;  %680 = vmatpush1.bf16.msra.mxu1 %v614_v40  ;;  %v652_v31 = vpack.c.bf16 %v323_v29, %v321_v28  ;;  %v325_v34 = vld [vmem:[%s829_s13 + $0x1e8] sm:$0xff]  ;;  %v327_v35 = vld [vmem:[%s829_s13 + $0x1f8] sm:$0xff]  ;;  %v654_v36 = vpack.c.bf16 %v322_v33, %v320_v32  ;;  %v324_v38 = vld [vmem:[%s829_s13 + $0x1e0] sm:$0xff]  ;;  %v483_v27 = vunpack.c.l.s4 %v753_v26 }
  0x27   : > { %617 = vmatprep.subr.bf16.mxu0 %v616_v41  ;;  %665 = vmatprep.subr.bf16.mxu1 %v616_v41  ;;  %v656_v37 = vpack.c.bf16 %v327_v35, %v325_v34  ;;  %v326_v39 = vld [vmem:[%s829_s13 + $0x1f0] sm:$0xff]  ;;  %v328_v41 = vld [vmem:[%s915_s1] sm:$0xff] }
  0x28   : > { %v658_v40 = vpack.c.bf16 %v326_v39, %v324_v38  ;;  %v330_v42 = vld [vmem:[%s915_s1 + $0x10] sm:$0xff]  ;;  %v484_v28 = vunpack.c.0.s8 %v483_v27 }
  0x2a   : > { %619 = vmatpush1.bf16.msra.mxu0 %v618_v46  ;;  %681 = vmatpush1.bf16.msra.mxu1 %v618_v46 }
  0x2b   : > { %621 = vmatprep.subr.bf16.mxu0 %v620_v47  ;;  %666 = vmatprep.subr.bf16.mxu1 %v620_v47 }
  0x2e   : > { %623 = vmatpush1.bf16.msra.mxu0 %v622_v52  ;;  %682 = vmatpush1.bf16.msra.mxu1 %v622_v52 }
  0x2f   : > { %625 = vmatprep.subr.bf16.mxu0 %v624_v53  ;;  %667 = vmatprep.subr.bf16.mxu1 %v624_v53 }
  0x32   : > { %627 = vmatpush1.bf16.msra.mxu0 %v626_v58  ;;  %683 = vmatpush1.bf16.msra.mxu1 %v626_v58 }
  0x33   : > { %629 = vmatprep.subr.bf16.mxu0 %v628_v59  ;;  %668 = vmatprep.subr.bf16.mxu1 %v628_v59 }
  0x36   : > { %631 = vmatpush1.bf16.msra.mxu0 %v630_v0  ;;  %684 = vmatpush1.bf16.msra.mxu1 %v630_v0 }
  0x37   : > { %633 = vmatprep.subr.bf16.mxu0 %v632_v1  ;;  %669 = vmatprep.subr.bf16.mxu1 %v632_v1 }
  0x3a   : > { %635 = vmatpush1.bf16.msra.mxu0 %v634_v6  ;;  %685 = vmatpush1.bf16.msra.mxu1 %v634_v6 }
  0x3b   : > { %637 = vmatprep.subr.bf16.mxu0 %v636_v7  ;;  %670 = vmatprep.subr.bf16.mxu1 %v636_v7 }
  0x3e   : > { %639 = vmatpush1.bf16.msra.mxu0 %v638_v12  ;;  %686 = vmatpush1.bf16.msra.mxu1 %v638_v12 }
  0x3f   : > { %641 = vmatprep.subr.bf16.mxu0 %v640_v13  ;;  %671 = vmatprep.subr.bf16.mxu1 %v640_v13 }
  0x42   : > { %643 = vmatpush1.bf16.msra.mxu0 %v642_v18  ;;  %687 = vmatpush1.bf16.msra.mxu1 %v642_v18 }
  0x43   : > { %645 = vmatprep.subr.bf16.mxu0 %v644_v19  ;;  %672 = vmatprep.subr.bf16.mxu1 %v644_v19 }
  0x46   : > { %647 = vmatpush1.bf16.msra.mxu0 %v646_v24  ;;  %688 = vmatpush1.bf16.msra.mxu1 %v646_v24 }
  0x47   : > { %649 = vmatprep.subr.bf16.mxu0 %v648_v25  ;;  %673 = vmatprep.subr.bf16.mxu1 %v648_v25 }
  0x4a   : > { %651 = vmatpush1.bf16.msra.mxu0 %v650_v30  ;;  %689 = vmatpush1.bf16.msra.mxu1 %v650_v30  ;;  %v487_v30 = vsub.s32 %v484_v28, %v462_v4 }
  0x4b   : > { %653 = vmatprep.subr.bf16.mxu0 %v652_v31  ;;  %674 = vmatprep.subr.bf16.mxu1 %v652_v31 }
  0x4e   : > { %655 = vmatpush1.bf16.msra.mxu0 %v654_v36  ;;  %690 = vmatpush1.bf16.msra.mxu1 %v654_v36 }
  0x4f   : > { %657 = vmatprep.subr.bf16.mxu0 %v656_v37  ;;  %675 = vmatprep.subr.bf16.mxu1 %v656_v37 }
  0x52   : > { %659 = vmatpush1.bf16.msra.mxu0 %v658_v40  ;;  %691 = vmatpush1.bf16.msra.mxu1 %v658_v40 }
  0x55   : > { %409 = vmatmul.mubr.f32.vlgmr.msra.gmra.mrb[0].mxu0 %v328_v41  ;;  %415 = vmatmul.mubr.f32.vlgmr.msra.gmra.mrb[0].mxu1 %v330_v42 }
  0x89   : > { %v337_v43 = vpop.permute.xlu0 %336  ;;  %v430_v44 = vpop.permute.xlu1 %429 }
  0x8d   : > { %v342_v45 = vpop.permute.xlu0 %341  ;;  %v435_v56 = vpop.permute.xlu1 %434 }
  0x91   : > { %v459_v11 = vpop.permute.xlu0 %458 }
  0x92   : > { %v464_v15 = vrot.slane %v459_v11, %v463_v9 }
 0x128   : > { %v410_v46 = vpop.f32.mrb[0].mxu0  ;;  %v416_v47 = vpop.f32.mrb[0].mxu1 }
 0x129   : > { %v411_v48 = vadd.f32 %v410_v46, %v337_v43  ;;  %v417_v49 = vadd.f32 %v416_v47, %v342_v45  ;;  %v412_v50 = vpop.f32.mrb[1].mxu0  ;;  %v418_v51 = vpop.f32.mrb[1].mxu1 }
 0x12a   : > { %v413_v52 = vadd.f32 %v412_v50, %v337_v43  ;;  %v419_v53 = vadd.f32 %v418_v51, %v342_v45 }
 0x12b   : > { %v421_v54 = vmax.f32 %v411_v48, 0.0  ;;  %v423_v55 = vmax.f32 %v417_v49, 0.0 }
 0x12c   : > { %v422_v57 = vmax.f32 %v413_v52, 0.0  ;;  %v424_v58 = vmax.f32 %v419_v53, 0.0 }
 0x12d   : > { %v437_v59 = vmul.f32 %v430_v44, %v421_v54  ;;  %v439_v60 = vmul.f32 %v435_v56, %v423_v55 }
 0x12e   : > { %v438_v61 = vmul.f32 %v430_v44, %v422_v57  ;;  %v440_v62 = vmul.f32 %v435_v56, %v424_v58 }
 0x12f   : > { %v441_v0 = vadd.f32 %v439_v60, %v437_v59 }
 0x130   : > { %v448_v1 = vadd.f32 %v440_v62, %v438_v61 }
 0x131   : > { %v442_v2 = vrot.slane %v441_v0, 4 }
 0x132   : > { %v449_v3 = vrot.slane %v448_v1, 4 }
 0x133   : > { %v443_v5 = vadd.f32 %v442_v2, %v441_v0 }
 0x134   : > { %v450_v6 = vadd.f32 %v449_v3, %v448_v1 }
 0x135   : > { %v444_v7 = vrot.slane %v443_v5, 2 }
 0x136   : > { %v451_v8 = vrot.slane %v450_v6, 2 }
 0x137   : > { %v445_v10 = vadd.f32 %v444_v7, %v443_v5 }
 0x138   : > { %v452_v12 = vadd.f32 %v451_v8, %v450_v6 }
 0x139   : > { %v446_v13 = vrot.slane %v445_v10, 1 }
 0x13a   : > { %v453_v14 = vrot.slane %v452_v12, 1 }
 0x13b   : > { %v447_v16 = vadd.f32 %v446_v13, %v445_v10 }
 0x13c   : > { %v454_v17 = vadd.f32 %v453_v14, %v452_v12 }
 0x13d   : > { %v465_v18 = vadd.f32 %v464_v15, %v447_v16 }
 0x13e   : > { %v466_v19 = vadd.f32 %v464_v15, %v454_v17 }
 0x13f   : > { %v591_v20 = vmul.f32 -1.442695, %v465_v18 }
 0x140   : > { %v592_v21 = vmul.f32 -1.442695, %v466_v19 }
 0x141   : > { %720 = vpow2.f32 %v591_v20 }
 0x142   : > { %722 = vpow2.f32 %v592_v21 }
 0x14b   : > { %v721_v22 = vpop.eup %720 }
 0x14c   : > { %v723_v23 = vpop.eup %722  ;;  %v473_v24 = vadd.f32 1.0, %v721_v22 }
 0x14d   : > { %v474_v25 = vadd.f32 1.0, %v723_v23 }
 0x14e   : > { %724 = vrcp.f32 %v473_v24 }
 0x14f   : > { %726 = vrcp.f32 %v474_v25 }
 0x158   : > { %v725_v29 = vpop.eup %724 }
 0x159   : > { %v727_v31 = vpop.eup %726 }
 0x15a   : > { %v481_v32 = vcombine.low %v725_v29, %v727_v31 }
 0x15c   : > { %v488_v33 = vrot.slane %v481_v32, %v487_v30 }
 0x15e   : > { %v495_v34 = vrot.slane %v488_v33, %v487_v30 }
 0x160   : > { %501 = vst.msk [vmem:[%s262_s24] sm:$0x3] %vm499_vm0, %v495_v34 }
 0x161 PF: > { %s17_s22 = sadd.s32 1, %s750_s22   ;;  %s920_s20 = smov %s746_s21 }
 0x162   : > { %p14_p5 = scmp.ge.s32.totalorder %s17_s22, 4   ;;  %s921_s21 = smov %s923_s4 }
 0x164   :  { %16 = sbr.rel (!%p14_p5) target bundleno = 3 (0x3), region = 70 }

</bundles_post_ra>
